<compile_context>
chip_gen: v6e
topology: v6e:2x2x1
jax: 0.10.0
libtpu: 0.0.40
codegen_flags: <defaults>
</compile_context>

<pallas_src>
import functools

import jax
import jax.numpy as jnp
from jax.experimental import pallas as pl
from jax.experimental.pallas import tpu as pltpu


def _conv_kernel(x_ref, w_ref, b_ref, o_ref, xpad_ref, p_ref, *,
                 n, cin, h, w, kh_size, kw_size, cin_pad, wp, m_cols, padding):
    """One fused im2col GEMM for the whole batch.

    x_ref:    (N, Cin, H*W)       raw input, flattened spatial (row stride = W)
    w_ref:    (Cout_pad, K_pad)   weights in im2col row order (kh, kw, cin_pad), zero-padded
    b_ref:    (Cout_pad, 1)       bias column (zero-padded)
    o_ref:    (N, Cout_pad, M)    lane-dense output incl. wp-Wo junk cols (stripped outside)
    xpad_ref: (Cin_pad, Lflat)    scratch: zero-padded, flattened image plane (row stride wp)
    p_ref:    (K_pad, N*M)        scratch: im2col patch matrix
    """
    # Zero the padded plane once: covers the spatial halo, the wp-W extra columns and
    # the Cin_pad-Cin extra channel rows for ALL batch elements (interior pixels are
    # overwritten below at identical positions every batch, padding is never written).
    xpad_ref[...] = jnp.zeros_like(xpad_ref)

    for b in range(n):
        # In-kernel padding: scatter raw image rows into the padded flat plane.
        for r in range(h):
            dst = (r + padding) * wp + padding
            xpad_ref[:cin, dst:dst + w] = x_ref[b, :, r * w:(r + 1) * w]

        # Flat-shift im2col: window offset (kh, kw) is a contiguous lane slice of the
        # flattened padded plane starting at kh*wp + kw.  Every destination block is a
        # full 8-sublane store at a 128-multiple lane offset (unmasked vst).
        for kh in range(kh_size):
            for kw in range(kw_size):
                idx = kh * kw_size + kw
                off = kh * wp + kw
                p_ref[idx * cin_pad:(idx + 1) * cin_pad,
                      b * m_cols:(b + 1) * m_cols] = xpad_ref[:, off:off + m_cols]

    # Single MXU GEMM for the whole batch, f32 accumulation, fused bias add.
    acc = jnp.dot(w_ref[...], p_ref[...], preferred_element_type=jnp.float32)
    acc = acc + b_ref[...]

    # Per-image column slices land on 128-lane boundaries -> full-tile stores.
    for b in range(n):
        o_ref[b, :, :] = acc[:, b * m_cols:(b + 1) * m_cols].astype(o_ref.dtype)


def partial_conv2d(x_nchw, weight_oihw, bias, *, stride=1, padding=1):
    """PartialConv2d forward. x: (N, Cin, H, W); weight: (Cout, Cin, KH, KW); bias: (Cout,)."""
    n, cin, h, w = x_nchw.shape
    cout, cin_w, kh, kw = weight_oihw.shape
    assert cin == cin_w
    # TODO(synk): stride > 1 needs strided-window gathers and falls outside the
    # flat-shift im2col fast path; the module instance in the spec uses stride=1.
    assert stride == 1, "this kernel implements the stride=1 fast path"

    h_out = h + 2 * padding - kh + 1
    w_out = w + 2 * padding - kw + 1
    hp = h + 2 * padding

    # (8,128)-friendly paddings.
    cin_pad = -(-cin // 8) * 8            # 4 -> 8: aligned 8-sublane P-build stores
    cout_pad = -(-cout // 8) * 8          # 4 -> 8: full-vreg accumulator / output rows
    wp = w + 2 * padding                  # padded row stride; bump until M = h_out*wp
    while (h_out * wp) % 128 != 0:        # is a multiple of 128 (18 -> 24 here)
        wp += 1
    m_cols = h_out * wp                   # GEMM M per image (incl. wp - w_out junk cols)
    k_pad = kh * kw * cin_pad             # GEMM K (zero rows for the cin padding)

    # Flat padded-plane length: the largest shifted slice must stay in bounds.
    lflat = max(hp * wp, (kh - 1) * wp + (kw - 1) + m_cols)
    lflat = -(-lflat // 128) * 128

    # Free reshape only: spatial stays on the lane axis, no transpose, no jnp.pad of x.
    x_flat = x_nchw.reshape(n, cin, h * w)

    # Weights -> (Cout_pad, KH*KW*Cin_pad) matching the patch-matrix row order (kh, kw, cin).
    w_mat = jnp.pad(
        jnp.transpose(weight_oihw, (0, 2, 3, 1)),
        ((0, cout_pad - cout), (0, 0), (0, 0), (0, cin_pad - cin)),
    ).reshape(cout_pad, k_pad)
    b_col = jnp.pad(bias, (0, cout_pad - cout)).reshape(cout_pad, 1)

    kernel = functools.partial(
        _conv_kernel, n=n, cin=cin, h=h, w=w, kh_size=kh, kw_size=kw,
        cin_pad=cin_pad, wp=wp, m_cols=m_cols, padding=padding)

    itemsize = jnp.dtype(x_nchw.dtype).itemsize
    cost = pl.CostEstimate(
        flops=2 * cout_pad * k_pad * n * m_cols,
        transcendentals=0,
        bytes_accessed=(x_flat.size + w_mat.size + b_col.size
                        + n * cout_pad * m_cols) * itemsize)

    out_flat = pl.pallas_call(
        kernel,
        out_shape=jax.ShapeDtypeStruct((n, cout_pad, m_cols), x_nchw.dtype),
        in_specs=[
            pl.BlockSpec(memory_space=pltpu.MemorySpace.VMEM),
            pl.BlockSpec(memory_space=pltpu.MemorySpace.VMEM),
            pl.BlockSpec(memory_space=pltpu.MemorySpace.VMEM),
        ],
        out_specs=pl.BlockSpec(memory_space=pltpu.MemorySpace.VMEM),
        scratch_shapes=[
            pltpu.VMEM((cin_pad, lflat), jnp.float32),
            pltpu.VMEM((k_pad, n * m_cols), jnp.float32),
        ],
        cost_estimate=cost,
    )(x_flat, w_mat, b_col)

    # Strip padded channels and junk columns; result is already NCHW (no transpose).
    return out_flat.reshape(n, cout_pad, h_out, wp)[:, :cout, :, :w_out]


if __name__ == "__main__":
    # Parent Conv2d: in_channels=4, out_channels=8, kernel 3x3, stride 1, padding 1, bias.
    # PartialConv2d slice: out_channel_begin=2, out_channel_end=6 -> 4 output channels.
    key = jax.random.PRNGKey(0)
    k_w, k_b, k_x = jax.random.split(key, 3)

    in_channels, out_channels_total = 4, 8
    oc_begin, oc_end = 2, 6
    ksize, stride, padding = 3, 1, 1

    full_weight = jax.random.normal(
        k_w, (out_channels_total, in_channels, ksize, ksize), dtype=jnp.float32) * 0.1
    full_bias = jax.random.normal(k_b, (out_channels_total,), dtype=jnp.float32) * 0.1

    # Deterministic "parameter slicing" exactly as PartialConv2d.__init__ does.
    weight = full_weight[oc_begin:oc_end]
    bias = full_bias[oc_begin:oc_end]

    x = jax.random.normal(k_x, (2, in_channels, 16, 16), dtype=jnp.float32)

    out = partial_conv2d(x, weight, bias, stride=stride, padding=padding)
    out = jax.block_until_ready(out)

    # Sanity check against XLA's reference convolution (same NCHW semantics as PyTorch).
    ref = jax.lax.conv_general_dilated(
        x, weight, window_strides=(stride, stride),
        padding=((padding, padding), (padding, padding)),
        dimension_numbers=("NCHW", "OIHW", "NCHW"),
    ) + bias.reshape(1, -1, 1, 1)
    assert out.shape == (2, oc_end - oc_begin, 16, 16)
    assert jnp.allclose(out, ref, atol=1e-4, rtol=1e-4)

    print("KERNEL_OK")
</pallas_src>

<mosaic_0001>
module attributes {stable_mosaic.version = 11 : i64} {
  func.func @_conv_kernel(%arg0: memref<2x4x256xf32, #tpu.memory_space<vmem>>, %arg1: memref<8x72xf32, #tpu.memory_space<vmem>>, %arg2: memref<8x1xf32, #tpu.memory_space<vmem>>, %arg3: memref<2x8x384xf32, #tpu.memory_space<vmem>>, %arg4: memref<8x512xf32, #tpu.memory_space<vmem>>, %arg5: memref<72x768xf32, #tpu.memory_space<vmem>>) attributes {dimension_semantics = [], scalar_prefetch = 0 : i64, scratch_operands = 2 : i64, tpu.core_type = #tpu.core_type<tc>} {
    %cst = arith.constant 0.000000e+00 : f32
    %0 = vector.broadcast %cst : f32 to vector<8x512xf32>
    %c0 = arith.constant 0 : index
    %c0_0 = arith.constant 0 : index
    %1 = vector.load %arg4[%c0, %c0_0] : memref<8x512xf32, #tpu.memory_space<vmem>>, vector<8x512xf32>
    tpu.vector_store %arg4[%c0, %c0_0], %0 {strides = array<i32>} : memref<8x512xf32, #tpu.memory_space<vmem>>, vector<8x512xf32>,
    %c0_1 = arith.constant 0 : index
    %c0_2 = arith.constant 0 : index
    %c0_3 = arith.constant 0 : index
    %2 = vector.load %arg0[%c0_1, %c0_2, %c0_3] : memref<2x4x256xf32, #tpu.memory_space<vmem>>, vector<1x4x16xf32>
    %3 = vector.shape_cast %2 : vector<1x4x16xf32> to vector<4x16xf32>
    %c0_4 = arith.constant 0 : index
    %c25 = arith.constant 25 : index
    %4 = vector.load %arg4[%c0_4, %c25] : memref<8x512xf32, #tpu.memory_space<vmem>>, vector<4x16xf32>
    tpu.vector_store %arg4[%c0_4, %c25], %3 {strides = array<i32>} : memref<8x512xf32, #tpu.memory_space<vmem>>, vector<4x16xf32>,
    %c0_5 = arith.constant 0 : index
    %c0_6 = arith.constant 0 : index
    %c16 = arith.constant 16 : index
    %5 = vector.load %arg0[%c0_5, %c0_6, %c16] : memref<2x4x256xf32, #tpu.memory_space<vmem>>, vector<1x4x16xf32>
    %6 = vector.shape_cast %5 : vector<1x4x16xf32> to vector<4x16xf32>
    %c0_7 = arith.constant 0 : index
    %c49 = arith.constant 49 : index
    %7 = vector.load %arg4[%c0_7, %c49] : memref<8x512xf32, #tpu.memory_space<vmem>>, vector<4x16xf32>
    tpu.vector_store %arg4[%c0_7, %c49], %6 {strides = array<i32>} : memref<8x512xf32, #tpu.memory_space<vmem>>, vector<4x16xf32>,
    %c0_8 = arith.constant 0 : index
    %c0_9 = arith.constant 0 : index
    %c32 = arith.constant 32 : index
    %8 = vector.load %arg0[%c0_8, %c0_9, %c32] : memref<2x4x256xf32, #tpu.memory_space<vmem>>, vector<1x4x16xf32>
    %9 = vector.shape_cast %8 : vector<1x4x16xf32> to vector<4x16xf32>
    %c0_10 = arith.constant 0 : index
    %c73 = arith.constant 73 : index
    %10 = vector.load %arg4[%c0_10, %c73] : memref<8x512xf32, #tpu.memory_space<vmem>>, vector<4x16xf32>
    tpu.vector_store %arg4[%c0_10, %c73], %9 {strides = array<i32>} : memref<8x512xf32, #tpu.memory_space<vmem>>, vector<4x16xf32>,
    %c0_11 = arith.constant 0 : index
    %c0_12 = arith.constant 0 : index
    %c48 = arith.constant 48 : index
    %11 = vector.load %arg0[%c0_11, %c0_12, %c48] : memref<2x4x256xf32, #tpu.memory_space<vmem>>, vector<1x4x16xf32>
    %12 = vector.shape_cast %11 : vector<1x4x16xf32> to vector<4x16xf32>
    %c0_13 = arith.constant 0 : index
    %c97 = arith.constant 97 : index
    %13 = vector.load %arg4[%c0_13, %c97] : memref<8x512xf32, #tpu.memory_space<vmem>>, vector<4x16xf32>
    tpu.vector_store %arg4[%c0_13, %c97], %12 {strides = array<i32>} : memref<8x512xf32, #tpu.memory_space<vmem>>, vector<4x16xf32>,
    %c0_14 = arith.constant 0 : index
    %c0_15 = arith.constant 0 : index
    %c64 = arith.constant 64 : index
    %14 = vector.load %arg0[%c0_14, %c0_15, %c64] : memref<2x4x256xf32, #tpu.memory_space<vmem>>, vector<1x4x16xf32>
    %15 = vector.shape_cast %14 : vector<1x4x16xf32> to vector<4x16xf32>
    %c0_16 = arith.constant 0 : index
    %c121 = arith.constant 121 : index
    %16 = vector.load %arg4[%c0_16, %c121] : memref<8x512xf32, #tpu.memory_space<vmem>>, vector<4x16xf32>
    tpu.vector_store %arg4[%c0_16, %c121], %15 {strides = array<i32>} : memref<8x512xf32, #tpu.memory_space<vmem>>, vector<4x16xf32>,
    %c0_17 = arith.constant 0 : index
    %c0_18 = arith.constant 0 : index
    %c80 = arith.constant 80 : index
    %17 = vector.load %arg0[%c0_17, %c0_18, %c80] : memref<2x4x256xf32, #tpu.memory_space<vmem>>, vector<1x4x16xf32>
    %18 = vector.shape_cast %17 : vector<1x4x16xf32> to vector<4x16xf32>
    %c0_19 = arith.constant 0 : index
    %c145 = arith.constant 145 : index
    %19 = vector.load %arg4[%c0_19, %c145] : memref<8x512xf32, #tpu.memory_space<vmem>>, vector<4x16xf32>
    tpu.vector_store %arg4[%c0_19, %c145], %18 {strides = array<i32>} : memref<8x512xf32, #tpu.memory_space<vmem>>, vector<4x16xf32>,
    %c0_20 = arith.constant 0 : index
    %c0_21 = arith.constant 0 : index
    %c96 = arith.constant 96 : index
    %20 = vector.load %arg0[%c0_20, %c0_21, %c96] : memref<2x4x256xf32, #tpu.memory_space<vmem>>, vector<1x4x16xf32>
    %21 = vector.shape_cast %20 : vector<1x4x16xf32> to vector<4x16xf32>
    %c0_22 = arith.constant 0 : index
    %c169 = arith.constant 169 : index
    %22 = vector.load %arg4[%c0_22, %c169] : memref<8x512xf32, #tpu.memory_space<vmem>>, vector<4x16xf32>
    tpu.vector_store %arg4[%c0_22, %c169], %21 {strides = array<i32>} : memref<8x512xf32, #tpu.memory_space<vmem>>, vector<4x16xf32>,
    %c0_23 = arith.constant 0 : index
    %c0_24 = arith.constant 0 : index
    %c112 = arith.constant 112 : index
    %23 = vector.load %arg0[%c0_23, %c0_24, %c112] : memref<2x4x256xf32, #tpu.memory_space<vmem>>, vector<1x4x16xf32>
    %24 = vector.shape_cast %23 : vector<1x4x16xf32> to vector<4x16xf32>
    %c0_25 = arith.constant 0 : index
    %c193 = arith.constant 193 : index
    %25 = vector.load %arg4[%c0_25, %c193] : memref<8x512xf32, #tpu.memory_space<vmem>>, vector<4x16xf32>
    tpu.vector_store %arg4[%c0_25, %c193], %24 {strides = array<i32>} : memref<8x512xf32, #tpu.memory_space<vmem>>, vector<4x16xf32>,
    %c0_26 = arith.constant 0 : index
    %c0_27 = arith.constant 0 : index
    %c128 = arith.constant 128 : index
    %26 = vector.load %arg0[%c0_26, %c0_27, %c128] : memref<2x4x256xf32, #tpu.memory_space<vmem>>, vector<1x4x16xf32>
    %27 = vector.shape_cast %26 : vector<1x4x16xf32> to vector<4x16xf32>
    %c0_28 = arith.constant 0 : index
    %c217 = arith.constant 217 : index
    %28 = vector.load %arg4[%c0_28, %c217] : memref<8x512xf32, #tpu.memory_space<vmem>>, vector<4x16xf32>
    tpu.vector_store %arg4[%c0_28, %c217], %27 {strides = array<i32>} : memref<8x512xf32, #tpu.memory_space<vmem>>, vector<4x16xf32>,
    %c0_29 = arith.constant 0 : index
    %c0_30 = arith.constant 0 : index
    %c144 = arith.constant 144 : index
    %29 = vector.load %arg0[%c0_29, %c0_30, %c144] : memref<2x4x256xf32, #tpu.memory_space<vmem>>, vector<1x4x16xf32>
    %30 = vector.shape_cast %29 : vector<1x4x16xf32> to vector<4x16xf32>
    %c0_31 = arith.constant 0 : index
    %c241 = arith.constant 241 : index
    %31 = vector.load %arg4[%c0_31, %c241] : memref<8x512xf32, #tpu.memory_space<vmem>>, vector<4x16xf32>
    tpu.vector_store %arg4[%c0_31, %c241], %30 {strides = array<i32>} : memref<8x512xf32, #tpu.memory_space<vmem>>, vector<4x16xf32>,
    %c0_32 = arith.constant 0 : index
    %c0_33 = arith.constant 0 : index
    %c160 = arith.constant 160 : index
    %32 = vector.load %arg0[%c0_32, %c0_33, %c160] : memref<2x4x256xf32, #tpu.memory_space<vmem>>, vector<1x4x16xf32>
    %33 = vector.shape_cast %32 : vector<1x4x16xf32> to vector<4x16xf32>
    %c0_34 = arith.constant 0 : index
    %c265 = arith.constant 265 : index
    %34 = vector.load %arg4[%c0_34, %c265] : memref<8x512xf32, #tpu.memory_space<vmem>>, vector<4x16xf32>
    tpu.vector_store %arg4[%c0_34, %c265], %33 {strides = array<i32>} : memref<8x512xf32, #tpu.memory_space<vmem>>, vector<4x16xf32>,
    %c0_35 = arith.constant 0 : index
    %c0_36 = arith.constant 0 : index
    %c176 = arith.constant 176 : index
    %35 = vector.load %arg0[%c0_35, %c0_36, %c176] : memref<2x4x256xf32, #tpu.memory_space<vmem>>, vector<1x4x16xf32>
    %36 = vector.shape_cast %35 : vector<1x4x16xf32> to vector<4x16xf32>
    %c0_37 = arith.constant 0 : index
    %c289 = arith.constant 289 : index
    %37 = vector.load %arg4[%c0_37, %c289] : memref<8x512xf32, #tpu.memory_space<vmem>>, vector<4x16xf32>
    tpu.vector_store %arg4[%c0_37, %c289], %36 {strides = array<i32>} : memref<8x512xf32, #tpu.memory_space<vmem>>, vector<4x16xf32>,
    %c0_38 = arith.constant 0 : index
    %c0_39 = arith.constant 0 : index
    %c192 = arith.constant 192 : index
    %38 = vector.load %arg0[%c0_38, %c0_39, %c192] : memref<2x4x256xf32, #tpu.memory_space<vmem>>, vector<1x4x16xf32>
    %39 = vector.shape_cast %38 : vector<1x4x16xf32> to vector<4x16xf32>
    %c0_40 = arith.constant 0 : index
    %c313 = arith.constant 313 : index
    %40 = vector.load %arg4[%c0_40, %c313] : memref<8x512xf32, #tpu.memory_space<vmem>>, vector<4x16xf32>
    tpu.vector_store %arg4[%c0_40, %c313], %39 {strides = array<i32>} : memref<8x512xf32, #tpu.memory_space<vmem>>, vector<4x16xf32>,
    %c0_41 = arith.constant 0 : index
    %c0_42 = arith.constant 0 : index
    %c208 = arith.constant 208 : index
    %41 = vector.load %arg0[%c0_41, %c0_42, %c208] : memref<2x4x256xf32, #tpu.memory_space<vmem>>, vector<1x4x16xf32>
    %42 = vector.shape_cast %41 : vector<1x4x16xf32> to vector<4x16xf32>
    %c0_43 = arith.constant 0 : index
    %c337 = arith.constant 337 : index
    %43 = vector.load %arg4[%c0_43, %c337] : memref<8x512xf32, #tpu.memory_space<vmem>>, vector<4x16xf32>
    tpu.vector_store %arg4[%c0_43, %c337], %42 {strides = array<i32>} : memref<8x512xf32, #tpu.memory_space<vmem>>, vector<4x16xf32>,
    %c0_44 = arith.constant 0 : index
    %c0_45 = arith.constant 0 : index
    %c224 = arith.constant 224 : index
    %44 = vector.load %arg0[%c0_44, %c0_45, %c224] : memref<2x4x256xf32, #tpu.memory_space<vmem>>, vector<1x4x16xf32>
    %45 = vector.shape_cast %44 : vector<1x4x16xf32> to vector<4x16xf32>
    %c0_46 = arith.constant 0 : index
    %c361 = arith.constant 361 : index
    %46 = vector.load %arg4[%c0_46, %c361] : memref<8x512xf32, #tpu.memory_space<vmem>>, vector<4x16xf32>
    tpu.vector_store %arg4[%c0_46, %c361], %45 {strides = array<i32>} : memref<8x512xf32, #tpu.memory_space<vmem>>, vector<4x16xf32>,
    %c0_47 = arith.constant 0 : index
    %c0_48 = arith.constant 0 : index
    %c240 = arith.constant 240 : index
    %47 = vector.load %arg0[%c0_47, %c0_48, %c240] : memref<2x4x256xf32, #tpu.memory_space<vmem>>, vector<1x4x16xf32>
    %48 = vector.shape_cast %47 : vector<1x4x16xf32> to vector<4x16xf32>
    %c0_49 = arith.constant 0 : index
    %c385 = arith.constant 385 : index
    %49 = vector.load %arg4[%c0_49, %c385] : memref<8x512xf32, #tpu.memory_space<vmem>>, vector<4x16xf32>
    tpu.vector_store %arg4[%c0_49, %c385], %48 {strides = array<i32>} : memref<8x512xf32, #tpu.memory_space<vmem>>, vector<4x16xf32>,
    %c0_50 = arith.constant 0 : index
    %c0_51 = arith.constant 0 : index
    %50 = vector.load %arg4[%c0_50, %c0_51] : memref<8x512xf32, #tpu.memory_space<vmem>>, vector<8x384xf32>
    %c0_52 = arith.constant 0 : index
    %c0_53 = arith.constant 0 : index
    %51 = vector.load %arg5[%c0_52, %c0_53] : memref<72x768xf32, #tpu.memory_space<vmem>>, vector<8x384xf32>
    tpu.vector_store %arg5[%c0_52, %c0_53], %50 {strides = array<i32>} : memref<72x768xf32, #tpu.memory_space<vmem>>, vector<8x384xf32>,
    %c0_54 = arith.constant 0 : index
    %c1 = arith.constant 1 : index
    %52 = vector.load %arg4[%c0_54, %c1] : memref<8x512xf32, #tpu.memory_space<vmem>>, vector<8x384xf32>
    %c8 = arith.constant 8 : index
    %c0_55 = arith.constant 0 : index
    %53 = vector.load %arg5[%c8, %c0_55] : memref<72x768xf32, #tpu.memory_space<vmem>>, vector<8x384xf32>
    tpu.vector_store %arg5[%c8, %c0_55], %52 {strides = array<i32>} : memref<72x768xf32, #tpu.memory_space<vmem>>, vector<8x384xf32>,
    %c0_56 = arith.constant 0 : index
    %c2 = arith.constant 2 : index
    %54 = vector.load %arg4[%c0_56, %c2] : memref<8x512xf32, #tpu.memory_space<vmem>>, vector<8x384xf32>
    %c16_57 = arith.constant 16 : index
    %c0_58 = arith.constant 0 : index
    %55 = vector.load %arg5[%c16_57, %c0_58] : memref<72x768xf32, #tpu.memory_space<vmem>>, vector<8x384xf32>
    tpu.vector_store %arg5[%c16_57, %c0_58], %54 {strides = array<i32>} : memref<72x768xf32, #tpu.memory_space<vmem>>, vector<8x384xf32>,
    %c0_59 = arith.constant 0 : index
    %c24 = arith.constant 24 : index
    %56 = vector.load %arg4[%c0_59, %c24] : memref<8x512xf32, #tpu.memory_space<vmem>>, vector<8x384xf32>
    %c24_60 = arith.constant 24 : index
    %c0_61 = arith.constant 0 : index
    %57 = vector.load %arg5[%c24_60, %c0_61] : memref<72x768xf32, #tpu.memory_space<vmem>>, vector<8x384xf32>
    tpu.vector_store %arg5[%c24_60, %c0_61], %56 {strides = array<i32>} : memref<72x768xf32, #tpu.memory_space<vmem>>, vector<8x384xf32>,
    %c0_62 = arith.constant 0 : index
    %c25_63 = arith.constant 25 : index
    %58 = vector.load %arg4[%c0_62, %c25_63] : memref<8x512xf32, #tpu.memory_space<vmem>>, vector<8x384xf32>
    %c32_64 = arith.constant 32 : index
    %c0_65 = arith.constant 0 : index
    %59 = vector.load %arg5[%c32_64, %c0_65] : memref<72x768xf32, #tpu.memory_space<vmem>>, vector<8x384xf32>
    tpu.vector_store %arg5[%c32_64, %c0_65], %58 {strides = array<i32>} : memref<72x768xf32, #tpu.memory_space<vmem>>, vector<8x384xf32>,
    %c0_66 = arith.constant 0 : index
    %c26 = arith.constant 26 : index
    %60 = vector.load %arg4[%c0_66, %c26] : memref<8x512xf32, #tpu.memory_space<vmem>>, vector<8x384xf32>
    %c40 = arith.constant 40 : index
    %c0_67 = arith.constant 0 : index
    %61 = vector.load %arg5[%c40, %c0_67] : memref<72x768xf32, #tpu.memory_space<vmem>>, vector<8x384xf32>
    tpu.vector_store %arg5[%c40, %c0_67], %60 {strides = array<i32>} : memref<72x768xf32, #tpu.memory_space<vmem>>, vector<8x384xf32>,
    %c0_68 = arith.constant 0 : index
    %c48_69 = arith.constant 48 : index
    %62 = vector.load %arg4[%c0_68, %c48_69] : memref<8x512xf32, #tpu.memory_space<vmem>>, vector<8x384xf32>
    %c48_70 = arith.constant 48 : index
    %c0_71 = arith.constant 0 : index
    %63 = vector.load %arg5[%c48_70, %c0_71] : memref<72x768xf32, #tpu.memory_space<vmem>>, vector<8x384xf32>
    tpu.vector_store %arg5[%c48_70, %c0_71], %62 {strides = array<i32>} : memref<72x768xf32, #tpu.memory_space<vmem>>, vector<8x384xf32>,
    %c0_72 = arith.constant 0 : index
    %c49_73 = arith.constant 49 : index
    %64 = vector.load %arg4[%c0_72, %c49_73] : memref<8x512xf32, #tpu.memory_space<vmem>>, vector<8x384xf32>
    %c56 = arith.constant 56 : index
    %c0_74 = arith.constant 0 : index
    %65 = vector.load %arg5[%c56, %c0_74] : memref<72x768xf32, #tpu.memory_space<vmem>>, vector<8x384xf32>
    tpu.vector_store %arg5[%c56, %c0_74], %64 {strides = array<i32>} : memref<72x768xf32, #tpu.memory_space<vmem>>, vector<8x384xf32>,
    %c0_75 = arith.constant 0 : index
    %c50 = arith.constant 50 : index
    %66 = vector.load %arg4[%c0_75, %c50] : memref<8x512xf32, #tpu.memory_space<vmem>>, vector<8x384xf32>
    %c64_76 = arith.constant 64 : index
    %c0_77 = arith.constant 0 : index
    %67 = vector.load %arg5[%c64_76, %c0_77] : memref<72x768xf32, #tpu.memory_space<vmem>>, vector<8x384xf32>
    tpu.vector_store %arg5[%c64_76, %c0_77], %66 {strides = array<i32>} : memref<72x768xf32, #tpu.memory_space<vmem>>, vector<8x384xf32>,
    %c1_78 = arith.constant 1 : index
    %c0_79 = arith.constant 0 : index
    %c0_80 = arith.constant 0 : index
    %68 = vector.load %arg0[%c1_78, %c0_79, %c0_80] : memref<2x4x256xf32, #tpu.memory_space<vmem>>, vector<1x4x16xf32>
    %69 = vector.shape_cast %68 : vector<1x4x16xf32> to vector<4x16xf32>
    %c0_81 = arith.constant 0 : index
    %c25_82 = arith.constant 25 : index
    %70 = vector.load %arg4[%c0_81, %c25_82] : memref<8x512xf32, #tpu.memory_space<vmem>>, vector<4x16xf32>
    tpu.vector_store %arg4[%c0_81, %c25_82], %69 {strides = array<i32>} : memref<8x512xf32, #tpu.memory_space<vmem>>, vector<4x16xf32>,
    %c1_83 = arith.constant 1 : index
    %c0_84 = arith.constant 0 : index
    %c16_85 = arith.constant 16 : index
    %71 = vector.load %arg0[%c1_83, %c0_84, %c16_85] : memref<2x4x256xf32, #tpu.memory_space<vmem>>, vector<1x4x16xf32>
    %72 = vector.shape_cast %71 : vector<1x4x16xf32> to vector<4x16xf32>
    %c0_86 = arith.constant 0 : index
    %c49_87 = arith.constant 49 : index
    %73 = vector.load %arg4[%c0_86, %c49_87] : memref<8x512xf32, #tpu.memory_space<vmem>>, vector<4x16xf32>
    tpu.vector_store %arg4[%c0_86, %c49_87], %72 {strides = array<i32>} : memref<8x512xf32, #tpu.memory_space<vmem>>, vector<4x16xf32>,
    %c1_88 = arith.constant 1 : index
    %c0_89 = arith.constant 0 : index
    %c32_90 = arith.constant 32 : index
    %74 = vector.load %arg0[%c1_88, %c0_89, %c32_90] : memref<2x4x256xf32, #tpu.memory_space<vmem>>, vector<1x4x16xf32>
    %75 = vector.shape_cast %74 : vector<1x4x16xf32> to vector<4x16xf32>
    %c0_91 = arith.constant 0 : index
    %c73_92 = arith.constant 73 : index
    %76 = vector.load %arg4[%c0_91, %c73_92] : memref<8x512xf32, #tpu.memory_space<vmem>>, vector<4x16xf32>
    tpu.vector_store %arg4[%c0_91, %c73_92], %75 {strides = array<i32>} : memref<8x512xf32, #tpu.memory_space<vmem>>, vector<4x16xf32>,
    %c1_93 = arith.constant 1 : index
    %c0_94 = arith.constant 0 : index
    %c48_95 = arith.constant 48 : index
    %77 = vector.load %arg0[%c1_93, %c0_94, %c48_95] : memref<2x4x256xf32, #tpu.memory_space<vmem>>, vector<1x4x16xf32>
    %78 = vector.shape_cast %77 : vector<1x4x16xf32> to vector<4x16xf32>
    %c0_96 = arith.constant 0 : index
    %c97_97 = arith.constant 97 : index
    %79 = vector.load %arg4[%c0_96, %c97_97] : memref<8x512xf32, #tpu.memory_space<vmem>>, vector<4x16xf32>
    tpu.vector_store %arg4[%c0_96, %c97_97], %78 {strides = array<i32>} : memref<8x512xf32, #tpu.memory_space<vmem>>, vector<4x16xf32>,
    %c1_98 = arith.constant 1 : index
    %c0_99 = arith.constant 0 : index
    %c64_100 = arith.constant 64 : index
    %80 = vector.load %arg0[%c1_98, %c0_99, %c64_100] : memref<2x4x256xf32, #tpu.memory_space<vmem>>, vector<1x4x16xf32>
    %81 = vector.shape_cast %80 : vector<1x4x16xf32> to vector<4x16xf32>
    %c0_101 = arith.constant 0 : index
    %c121_102 = arith.constant 121 : index
    %82 = vector.load %arg4[%c0_101, %c121_102] : memref<8x512xf32, #tpu.memory_space<vmem>>, vector<4x16xf32>
    tpu.vector_store %arg4[%c0_101, %c121_102], %81 {strides = array<i32>} : memref<8x512xf32, #tpu.memory_space<vmem>>, vector<4x16xf32>,
    %c1_103 = arith.constant 1 : index
    %c0_104 = arith.constant 0 : index
    %c80_105 = arith.constant 80 : index
    %83 = vector.load %arg0[%c1_103, %c0_104, %c80_105] : memref<2x4x256xf32, #tpu.memory_space<vmem>>, vector<1x4x16xf32>
    %84 = vector.shape_cast %83 : vector<1x4x16xf32> to vector<4x16xf32>
    %c0_106 = arith.constant 0 : index
    %c145_107 = arith.constant 145 : index
    %85 = vector.load %arg4[%c0_106, %c145_107] : memref<8x512xf32, #tpu.memory_space<vmem>>, vector<4x16xf32>
    tpu.vector_store %arg4[%c0_106, %c145_107], %84 {strides = array<i32>} : memref<8x512xf32, #tpu.memory_space<vmem>>, vector<4x16xf32>,
    %c1_108 = arith.constant 1 : index
    %c0_109 = arith.constant 0 : index
    %c96_110 = arith.constant 96 : index
    %86 = vector.load %arg0[%c1_108, %c0_109, %c96_110] : memref<2x4x256xf32, #tpu.memory_space<vmem>>, vector<1x4x16xf32>
    %87 = vector.shape_cast %86 : vector<1x4x16xf32> to vector<4x16xf32>
    %c0_111 = arith.constant 0 : index
    %c169_112 = arith.constant 169 : index
    %88 = vector.load %arg4[%c0_111, %c169_112] : memref<8x512xf32, #tpu.memory_space<vmem>>, vector<4x16xf32>
    tpu.vector_store %arg4[%c0_111, %c169_112], %87 {strides = array<i32>} : memref<8x512xf32, #tpu.memory_space<vmem>>, vector<4x16xf32>,
    %c1_113 = arith.constant 1 : index
    %c0_114 = arith.constant 0 : index
    %c112_115 = arith.constant 112 : index
    %89 = vector.load %arg0[%c1_113, %c0_114, %c112_115] : memref<2x4x256xf32, #tpu.memory_space<vmem>>, vector<1x4x16xf32>
    %90 = vector.shape_cast %89 : vector<1x4x16xf32> to vector<4x16xf32>
    %c0_116 = arith.constant 0 : index
    %c193_117 = arith.constant 193 : index
    %91 = vector.load %arg4[%c0_116, %c193_117] : memref<8x512xf32, #tpu.memory_space<vmem>>, vector<4x16xf32>
    tpu.vector_store %arg4[%c0_116, %c193_117], %90 {strides = array<i32>} : memref<8x512xf32, #tpu.memory_space<vmem>>, vector<4x16xf32>,
    %c1_118 = arith.constant 1 : index
    %c0_119 = arith.constant 0 : index
    %c128_120 = arith.constant 128 : index
    %92 = vector.load %arg0[%c1_118, %c0_119, %c128_120] : memref<2x4x256xf32, #tpu.memory_space<vmem>>, vector<1x4x16xf32>
    %93 = vector.shape_cast %92 : vector<1x4x16xf32> to vector<4x16xf32>
    %c0_121 = arith.constant 0 : index
    %c217_122 = arith.constant 217 : index
    %94 = vector.load %arg4[%c0_121, %c217_122] : memref<8x512xf32, #tpu.memory_space<vmem>>, vector<4x16xf32>
    tpu.vector_store %arg4[%c0_121, %c217_122], %93 {strides = array<i32>} : memref<8x512xf32, #tpu.memory_space<vmem>>, vector<4x16xf32>,
    %c1_123 = arith.constant 1 : index
    %c0_124 = arith.constant 0 : index
    %c144_125 = arith.constant 144 : index
    %95 = vector.load %arg0[%c1_123, %c0_124, %c144_125] : memref<2x4x256xf32, #tpu.memory_space<vmem>>, vector<1x4x16xf32>
    %96 = vector.shape_cast %95 : vector<1x4x16xf32> to vector<4x16xf32>
    %c0_126 = arith.constant 0 : index
    %c241_127 = arith.constant 241 : index
    %97 = vector.load %arg4[%c0_126, %c241_127] : memref<8x512xf32, #tpu.memory_space<vmem>>, vector<4x16xf32>
    tpu.vector_store %arg4[%c0_126, %c241_127], %96 {strides = array<i32>} : memref<8x512xf32, #tpu.memory_space<vmem>>, vector<4x16xf32>,
    %c1_128 = arith.constant 1 : index
    %c0_129 = arith.constant 0 : index
    %c160_130 = arith.constant 160 : index
    %98 = vector.load %arg0[%c1_128, %c0_129, %c160_130] : memref<2x4x256xf32, #tpu.memory_space<vmem>>, vector<1x4x16xf32>
    %99 = vector.shape_cast %98 : vector<1x4x16xf32> to vector<4x16xf32>
    %c0_131 = arith.constant 0 : index
    %c265_132 = arith.constant 265 : index
    %100 = vector.load %arg4[%c0_131, %c265_132] : memref<8x512xf32, #tpu.memory_space<vmem>>, vector<4x16xf32>
    tpu.vector_store %arg4[%c0_131, %c265_132], %99 {strides = array<i32>} : memref<8x512xf32, #tpu.memory_space<vmem>>, vector<4x16xf32>,
    %c1_133 = arith.constant 1 : index
    %c0_134 = arith.constant 0 : index
    %c176_135 = arith.constant 176 : index
    %101 = vector.load %arg0[%c1_133, %c0_134, %c176_135] : memref<2x4x256xf32, #tpu.memory_space<vmem>>, vector<1x4x16xf32>
    %102 = vector.shape_cast %101 : vector<1x4x16xf32> to vector<4x16xf32>
    %c0_136 = arith.constant 0 : index
    %c289_137 = arith.constant 289 : index
    %103 = vector.load %arg4[%c0_136, %c289_137] : memref<8x512xf32, #tpu.memory_space<vmem>>, vector<4x16xf32>
    tpu.vector_store %arg4[%c0_136, %c289_137], %102 {strides = array<i32>} : memref<8x512xf32, #tpu.memory_space<vmem>>, vector<4x16xf32>,
    %c1_138 = arith.constant 1 : index
    %c0_139 = arith.constant 0 : index
    %c192_140 = arith.constant 192 : index
    %104 = vector.load %arg0[%c1_138, %c0_139, %c192_140] : memref<2x4x256xf32, #tpu.memory_space<vmem>>, vector<1x4x16xf32>
    %105 = vector.shape_cast %104 : vector<1x4x16xf32> to vector<4x16xf32>
    %c0_141 = arith.constant 0 : index
    %c313_142 = arith.constant 313 : index
    %106 = vector.load %arg4[%c0_141, %c313_142] : memref<8x512xf32, #tpu.memory_space<vmem>>, vector<4x16xf32>
    tpu.vector_store %arg4[%c0_141, %c313_142], %105 {strides = array<i32>} : memref<8x512xf32, #tpu.memory_space<vmem>>, vector<4x16xf32>,
    %c1_143 = arith.constant 1 : index
    %c0_144 = arith.constant 0 : index
    %c208_145 = arith.constant 208 : index
    %107 = vector.load %arg0[%c1_143, %c0_144, %c208_145] : memref<2x4x256xf32, #tpu.memory_space<vmem>>, vector<1x4x16xf32>
    %108 = vector.shape_cast %107 : vector<1x4x16xf32> to vector<4x16xf32>
    %c0_146 = arith.constant 0 : index
    %c337_147 = arith.constant 337 : index
    %109 = vector.load %arg4[%c0_146, %c337_147] : memref<8x512xf32, #tpu.memory_space<vmem>>, vector<4x16xf32>
    tpu.vector_store %arg4[%c0_146, %c337_147], %108 {strides = array<i32>} : memref<8x512xf32, #tpu.memory_space<vmem>>, vector<4x16xf32>,
    %c1_148 = arith.constant 1 : index
    %c0_149 = arith.constant 0 : index
    %c224_150 = arith.constant 224 : index
    %110 = vector.load %arg0[%c1_148, %c0_149, %c224_150] : memref<2x4x256xf32, #tpu.memory_space<vmem>>, vector<1x4x16xf32>
    %111 = vector.shape_cast %110 : vector<1x4x16xf32> to vector<4x16xf32>
    %c0_151 = arith.constant 0 : index
    %c361_152 = arith.constant 361 : index
    %112 = vector.load %arg4[%c0_151, %c361_152] : memref<8x512xf32, #tpu.memory_space<vmem>>, vector<4x16xf32>
    tpu.vector_store %arg4[%c0_151, %c361_152], %111 {strides = array<i32>} : memref<8x512xf32, #tpu.memory_space<vmem>>, vector<4x16xf32>,
    %c1_153 = arith.constant 1 : index
    %c0_154 = arith.constant 0 : index
    %c240_155 = arith.constant 240 : index
    %113 = vector.load %arg0[%c1_153, %c0_154, %c240_155] : memref<2x4x256xf32, #tpu.memory_space<vmem>>, vector<1x4x16xf32>
    %114 = vector.shape_cast %113 : vector<1x4x16xf32> to vector<4x16xf32>
    %c0_156 = arith.constant 0 : index
    %c385_157 = arith.constant 385 : index
    %115 = vector.load %arg4[%c0_156, %c385_157] : memref<8x512xf32, #tpu.memory_space<vmem>>, vector<4x16xf32>
    tpu.vector_store %arg4[%c0_156, %c385_157], %114 {strides = array<i32>} : memref<8x512xf32, #tpu.memory_space<vmem>>, vector<4x16xf32>,
    %c0_158 = arith.constant 0 : index
    %c0_159 = arith.constant 0 : index
    %116 = vector.load %arg4[%c0_158, %c0_159] : memref<8x512xf32, #tpu.memory_space<vmem>>, vector<8x384xf32>
    %c0_160 = arith.constant 0 : index
    %c384 = arith.constant 384 : index
    %117 = vector.load %arg5[%c0_160, %c384] : memref<72x768xf32, #tpu.memory_space<vmem>>, vector<8x384xf32>
    tpu.vector_store %arg5[%c0_160, %c384], %116 {strides = array<i32>} : memref<72x768xf32, #tpu.memory_space<vmem>>, vector<8x384xf32>,
    %c0_161 = arith.constant 0 : index
    %c1_162 = arith.constant 1 : index
    %118 = vector.load %arg4[%c0_161, %c1_162] : memref<8x512xf32, #tpu.memory_space<vmem>>, vector<8x384xf32>
    %c8_163 = arith.constant 8 : index
    %c384_164 = arith.constant 384 : index
    %119 = vector.load %arg5[%c8_163, %c384_164] : memref<72x768xf32, #tpu.memory_space<vmem>>, vector<8x384xf32>
    tpu.vector_store %arg5[%c8_163, %c384_164], %118 {strides = array<i32>} : memref<72x768xf32, #tpu.memory_space<vmem>>, vector<8x384xf32>,
    %c0_165 = arith.constant 0 : index
    %c2_166 = arith.constant 2 : index
    %120 = vector.load %arg4[%c0_165, %c2_166] : memref<8x512xf32, #tpu.memory_space<vmem>>, vector<8x384xf32>
    %c16_167 = arith.constant 16 : index
    %c384_168 = arith.constant 384 : index
    %121 = vector.load %arg5[%c16_167, %c384_168] : memref<72x768xf32, #tpu.memory_space<vmem>>, vector<8x384xf32>
    tpu.vector_store %arg5[%c16_167, %c384_168], %120 {strides = array<i32>} : memref<72x768xf32, #tpu.memory_space<vmem>>, vector<8x384xf32>,
    %c0_169 = arith.constant 0 : index
    %c24_170 = arith.constant 24 : index
    %122 = vector.load %arg4[%c0_169, %c24_170] : memref<8x512xf32, #tpu.memory_space<vmem>>, vector<8x384xf32>
    %c24_171 = arith.constant 24 : index
    %c384_172 = arith.constant 384 : index
    %123 = vector.load %arg5[%c24_171, %c384_172] : memref<72x768xf32, #tpu.memory_space<vmem>>, vector<8x384xf32>
    tpu.vector_store %arg5[%c24_171, %c384_172], %122 {strides = array<i32>} : memref<72x768xf32, #tpu.memory_space<vmem>>, vector<8x384xf32>,
    %c0_173 = arith.constant 0 : index
    %c25_174 = arith.constant 25 : index
    %124 = vector.load %arg4[%c0_173, %c25_174] : memref<8x512xf32, #tpu.memory_space<vmem>>, vector<8x384xf32>
    %c32_175 = arith.constant 32 : index
    %c384_176 = arith.constant 384 : index
    %125 = vector.load %arg5[%c32_175, %c384_176] : memref<72x768xf32, #tpu.memory_space<vmem>>, vector<8x384xf32>
    tpu.vector_store %arg5[%c32_175, %c384_176], %124 {strides = array<i32>} : memref<72x768xf32, #tpu.memory_space<vmem>>, vector<8x384xf32>,
    %c0_177 = arith.constant 0 : index
    %c26_178 = arith.constant 26 : index
    %126 = vector.load %arg4[%c0_177, %c26_178] : memref<8x512xf32, #tpu.memory_space<vmem>>, vector<8x384xf32>
    %c40_179 = arith.constant 40 : index
    %c384_180 = arith.constant 384 : index
    %127 = vector.load %arg5[%c40_179, %c384_180] : memref<72x768xf32, #tpu.memory_space<vmem>>, vector<8x384xf32>
    tpu.vector_store %arg5[%c40_179, %c384_180], %126 {strides = array<i32>} : memref<72x768xf32, #tpu.memory_space<vmem>>, vector<8x384xf32>,
    %c0_181 = arith.constant 0 : index
    %c48_182 = arith.constant 48 : index
    %128 = vector.load %arg4[%c0_181, %c48_182] : memref<8x512xf32, #tpu.memory_space<vmem>>, vector<8x384xf32>
    %c48_183 = arith.constant 48 : index
    %c384_184 = arith.constant 384 : index
    %129 = vector.load %arg5[%c48_183, %c384_184] : memref<72x768xf32, #tpu.memory_space<vmem>>, vector<8x384xf32>
    tpu.vector_store %arg5[%c48_183, %c384_184], %128 {strides = array<i32>} : memref<72x768xf32, #tpu.memory_space<vmem>>, vector<8x384xf32>,
    %c0_185 = arith.constant 0 : index
    %c49_186 = arith.constant 49 : index
    %130 = vector.load %arg4[%c0_185, %c49_186] : memref<8x512xf32, #tpu.memory_space<vmem>>, vector<8x384xf32>
    %c56_187 = arith.constant 56 : index
    %c384_188 = arith.constant 384 : index
    %131 = vector.load %arg5[%c56_187, %c384_188] : memref<72x768xf32, #tpu.memory_space<vmem>>, vector<8x384xf32>
    tpu.vector_store %arg5[%c56_187, %c384_188], %130 {strides = array<i32>} : memref<72x768xf32, #tpu.memory_space<vmem>>, vector<8x384xf32>,
    %c0_189 = arith.constant 0 : index
    %c50_190 = arith.constant 50 : index
    %132 = vector.load %arg4[%c0_189, %c50_190] : memref<8x512xf32, #tpu.memory_space<vmem>>, vector<8x384xf32>
    %c64_191 = arith.constant 64 : index
    %c384_192 = arith.constant 384 : index
    %133 = vector.load %arg5[%c64_191, %c384_192] : memref<72x768xf32, #tpu.memory_space<vmem>>, vector<8x384xf32>
    tpu.vector_store %arg5[%c64_191, %c384_192], %132 {strides = array<i32>} : memref<72x768xf32, #tpu.memory_space<vmem>>, vector<8x384xf32>,
    %c0_193 = arith.constant 0 : index
    %c0_194 = arith.constant 0 : index
    %134 = vector.load %arg1[%c0_193, %c0_194] : memref<8x72xf32, #tpu.memory_space<vmem>>, vector<8x72xf32>
    %c0_195 = arith.constant 0 : index
    %c0_196 = arith.constant 0 : index
    %135 = vector.load %arg5[%c0_195, %c0_196] : memref<72x768xf32, #tpu.memory_space<vmem>>, vector<72x768xf32>
    %cst_197 = arith.constant dense<0.000000e+00> : vector<8x768xf32>
    %136 = tpu.matmul %134, %135, %cst_197 {dimension_numbers = #tpu.dot_dimension_numbers<[1], [0], [0], [1], [0, 0, 1, 1], [], []>} : vector<8x72xf32>, vector<72x768xf32>, vector<8x768xf32> -> vector<8x768xf32>
    %c0_198 = arith.constant 0 : index
    %c0_199 = arith.constant 0 : index
    %137 = vector.load %arg2[%c0_198, %c0_199] : memref<8x1xf32, #tpu.memory_space<vmem>>, vector<8x1xf32>
    %138 = vector.broadcast %137 : vector<8x1xf32> to vector<8x768xf32>
    %139 = arith.addf %136, %138 : vector<8x768xf32>
    %140 = vector.extract_strided_slice %139 {offsets = [0, 0], sizes = [8, 384], strides = [1, 1]} : vector<8x768xf32> to vector<8x384xf32>
    %c0_200 = arith.constant 0 : index
    %c0_201 = arith.constant 0 : index
    %c0_202 = arith.constant 0 : index
    %141 = vector.load %arg3[%c0_200, %c0_201, %c0_202] : memref<2x8x384xf32, #tpu.memory_space<vmem>>, vector<1x8x384xf32>
    %142 = vector.shape_cast %141 : vector<1x8x384xf32> to vector<8x384xf32>
    %143 = vector.shape_cast %140 : vector<8x384xf32> to vector<1x8x384xf32>
    tpu.vector_store %arg3[%c0_200, %c0_201, %c0_202], %143 {strides = array<i32>} : memref<2x8x384xf32, #tpu.memory_space<vmem>>, vector<1x8x384xf32>,
    %144 = vector.extract_strided_slice %139 {offsets = [0, 384], sizes = [8, 384], strides = [1, 1]} : vector<8x768xf32> to vector<8x384xf32>
    %c1_203 = arith.constant 1 : index
    %c0_204 = arith.constant 0 : index
    %c0_205 = arith.constant 0 : index
    %145 = vector.load %arg3[%c1_203, %c0_204, %c0_205] : memref<2x8x384xf32, #tpu.memory_space<vmem>>, vector<1x8x384xf32>
    %146 = vector.shape_cast %145 : vector<1x8x384xf32> to vector<8x384xf32>
    %147 = vector.shape_cast %144 : vector<8x384xf32> to vector<1x8x384xf32>
    tpu.vector_store %arg3[%c1_203, %c0_204, %c0_205], %147 {strides = array<i32>} : memref<2x8x384xf32, #tpu.memory_space<vmem>>, vector<1x8x384xf32>,
    return
  }
}

</mosaic_0001>

<bundles_post_ra>
// kernel: tpu_custom_call.1
= control target key start
LH: loop header
LB: loop body
LE: loop exit
PB: predicated region body
PF: predicated region fallthrough
CT: control target
= control target key end

     0   :  { %8 = vsyncpa [#allocation5], 0  ;;  %s1429_s0 = inlined_call_operand.hbm [shape: f32[2,4,256], index: 0, kind: input, shape index: {}]   ;;  %s1430_s1 = inlined_call_operand.vmem [shape: f32[8,72], index: 1, kind: input, shape index: {}]   ;;  %s1431_s2 = inlined_call_operand.vmem [shape: f32[8,1], index: 2, kind: input, shape index: {}]   ;;  %s1432_s3 = inlined_call_operand.hbm [shape: f32[2,8,384], index: 3, kind: output, shape index: {}]  }
   0x1   :  { %9 = vsyncpa [#allocation6], 0  ;;  %s1050_s12 = smov [#allocation4]  }
   0x2   :  { %s15_s13 = sshll.u32 %s1050_s12, 4  ;;  %s16_s13 = int_to_ptr.vmem [resolvable:$true] %s15_s13 }
   0x3   :  { %s1014_s14 = scalar_lea.vmem %s16_s13, 256  ;;  %p1019_p1 = scmp.lt.s32.totalorder %s16_s13, %s16_s13 }
   0x4   :  { %p1015_p0 = scmp.ne.s32.totalorder %s16_s13, %s1014_s14  ;;  %p1020_p2 = scmp.lt.s32.totalorder %s1014_s14, %s1014_s14 }
   0x6   :  { %p1021_p3 = por %p1020_p2, %p1019_p1 }
   0x8   :  { %p1022_p4 = pnand %p1021_p3, %p1015_p0 }
   0xa   :  { %1025 = shalt.err (!%p1022_p4)
}
   0xb   :  { %s1051_s15 = smov 128   ;;  %s1052_s16 = smov 8  }
   0xc   :  { %21 = dma.hbm_to_vmem [thread:$0]  %s1429_s0, 256, %s16_s13, [#allocation5], %s1051_s15, %s1051_s15, %s1052_s16  }
   0xd   :  { %1046 = dma.done.wait [#allocation5], 256  }
   0xe   :  { %1047 = vsyncadd [#allocation5], 4294967040  ;;  %v1053_v0 = vmov 0.0   ;;  %v70_v1 = vld [vmem:[#allocation4] sm:$0xf]  ;;  %s1054_s19 = smov 65  }
   0xf   :  { %30 = vst [vmem:[#allocation2 + $0x8] sm:$0xff] %v1053_v0  ;;  %29 = vst [vmem:[#allocation2] sm:$0xff] %v1053_v0  ;;  %797 = vmatprep.mubr.f32.mxu0 %v1053_v0  ;;  %868 = vmatprep.mubr.f32.mxu1 %v1053_v0  ;;  %v61_v2 = vld [vmem:[#allocation4] sm:$0xf]  ;;  %s1055_s0 = smov 57   ;;  %s1056_s20 = smov 105  }
  0x10   :  { %31 = vst [vmem:[#allocation2 + $0x10] sm:$0xff] %v1053_v0  ;;  %32 = vst [vmem:[#allocation2 + $0x18] sm:$0xff] %v1053_v0  ;;  %72 = vrot.lane.b32.xlu1 %v70_v1, %s1054_s19  ;;  %63 = vrot.lane.b32.xlu0 %v61_v2, %s1055_s0  ;;  %v107_v3 = vld [vmem:[#allocation4 + $0x4] sm:$0xf]  ;;  %s1057_s21 = smov 97   ;;  %s1058_s22 = smov 73  }
  0x11   :  { %v98_v4 = vld [vmem:[#allocation4 + $0x4] sm:$0xf]  ;;  %v77_v5 = vld [vmem:[#allocation4] sm:$0xf]  ;;  %s1059_s23 = smov 25   ;;  %s1060_s24 = smov 33  }
  0x12   :  { %v33_v6 = vld [vmem:[#allocation4] sm:$0xf]  ;;  %v114_v8 = vld [vmem:[#allocation4 + $0x4] sm:$0xf]  ;;  %s1061_s25 = smov 113   ;;  %s1062_s26 = smov 121  }
  0x13   :  { %v40_v7 = vld [vmem:[#allocation4] sm:$0xf]  ;;  %v121_v9 = vld [vmem:[#allocation4 + $0x4] sm:$0xf]  ;;  %s1063_s27 = smov 81   ;;  %s1064_s28 = smov 89  }
  0x14   :  { %109 = vrot.lane.b32.xlu1 %v107_v3, %s1056_s20  ;;  %100 = vrot.lane.b32.xlu0 %v98_v4, %s1057_s21  ;;  %v84_v10 = vld [vmem:[#allocation4] sm:$0xf]  ;;  %v91_v11 = vld [vmem:[#allocation4 + $0x4] sm:$0xf]  ;;  %s1065_s29 = smov 41   ;;  %s1066_s30 = smov 49  }
  0x15   :  { %v47_v12 = vld [vmem:[#allocation4] sm:$0xf]  ;;  %v128_v14 = vld [vmem:[#allocation4 + $0x4] sm:$0xf]  ;;  %s1067_s4 = smov 1   ;;  %s1068_s5 = smov 17  }
  0x16   :  { %v54_v13 = vld [vmem:[#allocation4] sm:$0xf]  ;;  %v142_v15 = vld [vmem:[#allocation4 + $0x4] sm:$0xf]  ;;  %s1069_s6 = smov 9   ;;  %vm68_vm0 = vcmask 68608  }
  0x17   :  { %v135_v16 = vld [vmem:[#allocation4 + $0x4] sm:$0xf]  ;;  %v388_v17 = vld [vmem:[#allocation4 + $0x8] sm:$0xf]  ;;  %v419_v18 = vld [vmem:[#allocation4 + $0xc] sm:$0xf] }
  0x18   :  { %79 = vrot.lane.b32.xlu1 %v77_v5, %s1058_s22  ;;  %35 = vrot.lane.b32.xlu0 %v33_v6, %s1059_s23  ;;  %v364_v19 = vld [vmem:[#allocation4 + $0x8] sm:$0xf]  ;;  %v426_v21 = vld [vmem:[#allocation4 + $0xc] sm:$0xf]  ;;  %vm75_vm1 = vcmask 265352   ;;  %vm105_vm2 = vcmask 3072  }
  0x19   :  { %v395_v20 = vld [vmem:[#allocation4 + $0x8] sm:$0xf]  ;;  %v432_v24 = vld [vmem:[#allocation4 + $0xc] sm:$0xf]  ;;  %vm112_vm3 = vcmask 199752   ;;  %vm82_vm4 = vcmask 462152  }
  0x1a   :  { %v370_v22 = vld [vmem:[#allocation4 + $0x8] sm:$0xf]  ;;  %v438_v27 = vld [vmem:[#allocation4 + $0xc] sm:$0xf]  ;;  %vm38_vm5 = vcmask 330952   ;;  %vm45_vm6 = vcmask 527752  }
  0x1b   :  { %v401_v23 = vld [vmem:[#allocation4 + $0x8] sm:$0xf]  ;;  %v413_v29 = vld [vmem:[#allocation4 + $0xc] sm:$0xf]  ;;  %vm119_vm7 = vcmask 396552   ;;  %vm1433_vm8 = vcmask 593352  }
  0x1c   :  { %42 = vrot.lane.b32.xlu1 %v40_v7, %s1060_s24  ;;  %116 = vrot.lane.b32.xlu0 %v114_v8, %s1061_s25  ;;  %v376_v25 = vld [vmem:[#allocation4 + $0x8] sm:$0xf]  ;;  %v444_v30 = vld [vmem:[#allocation4 + $0xc] sm:$0xf]  ;;  %vm1434_vm9 = vcmask 658952   ;;  %vm96_vm10 = vcmask 855752  }
  0x1d   :  { %v407_v26 = vld [vmem:[#allocation4 + $0x8] sm:$0xf]  ;;  %v456_v31 = vld [vmem:[#allocation4 + $0xc] sm:$0xf]  ;;  %vm52_vm11 = vcmask 724552   ;;  %vm103_vm12 = vcmask 1044360  }
  0x1e   :  { %v382_v28 = vld [vmem:[#allocation4 + $0x8] sm:$0xf]  ;;  %v450_v32 = vld [vmem:[#allocation4 + $0xc] sm:$0xf]  ;;  %vm59_vm13 = vcmask 921352   ;;  %vm133_vm14 = vcmask 790152  }
  0x1f   :  { %vm66_vm15 = vcmask 1044424   ;;  %s1070_s7 = smov 78   ;;  %s1071_s8 = smov 79  }
  0x20   :  { %123 = vrot.lane.b32.xlu1 %v121_v9, %s1062_s26  ;;  %86 = vrot.lane.b32.xlu0 %v84_v10, %s1063_s27  ;;  %s1072_s9 = smov 80   ;;  %s1073_s10 = smov 102  }
  0x21   :  { %s1074_s11 = smov 103   ;;  %s1075_s12 = smov 104  }
  0x22   :  { %s1076_s13 = smov 126   ;;  %s1077_s14 = smov 127  }
  0x24   :  { %93 = vrot.lane.b32.xlu1 %v91_v11, %s1064_s28  ;;  %49 = vrot.lane.b32.xlu0 %v47_v12, %s1065_s29  ;;  %v1078_v12 = vmov 0  }
  0x25   :  { %1005 = vset.pattern.permute.xlu0 %v1078_v12 }
  0x28   :  { %56 = vrot.lane.b32.xlu1 %v54_v13, %s1066_s30  ;;  %130 = vrot.lane.b32.xlu0 %v128_v14, %s1067_s4 }
  0x2c   :  { %144 = vrot.lane.b32.xlu1 %v142_v15, %s1068_s5  ;;  %137 = vrot.lane.b32.xlu0 %v135_v16, %s1069_s6 }
  0x30   :  { %390 = vrot.lane.b32.xlu0 %v388_v17, %s1055_s0  ;;  %421 = vrot.lane.b32.xlu1 %v419_v18, %s1057_s21  ;;  %v723_v17 = vld [vmem:[%s1431_s2] sm:$0xff] }
  0x34   :  { %366 = vrot.lane.b32.xlu0 %v364_v19, %s1059_s23  ;;  %397 = vrot.lane.b32.xlu1 %v395_v20, %s1054_s19 }
  0x38   :  { %428 = vrot.lane.b32.xlu0 %v426_v21, %s1056_s20  ;;  %372 = vrot.lane.b32.xlu1 %v370_v22, %s1060_s24 }
  0x3c   :  { %403 = vrot.lane.b32.xlu0 %v401_v23, %s1058_s22  ;;  %434 = vrot.lane.b32.xlu1 %v432_v24, %s1061_s25 }
  0x40   :  { %378 = vrot.lane.b32.xlu0 %v376_v25, %s1065_s29  ;;  %409 = vrot.lane.b32.xlu1 %v407_v26, %s1063_s27 }
  0x44   :  { %440 = vrot.lane.b32.xlu0 %v438_v27, %s1062_s26  ;;  %384 = vrot.lane.b32.xlu1 %v382_v28, %s1066_s30 }
  0x48   :  { %415 = vrot.lane.b32.xlu0 %v413_v29, %s1064_s28  ;;  %446 = vrot.lane.b32.xlu1 %v444_v30, %s1067_s4 }
  0x4c   :  { %458 = vrot.lane.b32.xlu1 %v456_v31, %s1068_s5  ;;  %452 = vrot.lane.b32.xlu0 %v450_v32, %s1069_s6 }
  0x82   :  { %v73_v33 = vpop.permute.xlu1 %72  ;;  %v64_v34 = vpop.permute.xlu0 %63 }
  0x83   :  { %69 = vst.msk [vmem:[#allocation2 + $0x8] sm:$0xf] %vm68_vm0, %v64_v34 }
  0x84   :  { %76 = vst.msk [vmem:[#allocation2 + $0x8] sm:$0xf] %vm75_vm1, %v73_v33 }
  0x86   :  { %v110_v35 = vpop.permute.xlu1 %109  ;;  %v101_v36 = vpop.permute.xlu0 %100 }
  0x87   :  { %106 = vst.msk [vmem:[#allocation2 + $0x10] sm:$0xf] %vm105_vm2, %v101_v36 }
  0x88   :  { %113 = vst.msk [vmem:[#allocation2 + $0x10] sm:$0xf] %vm112_vm3, %v110_v35 }
  0x8a   :  { %v80_v37 = vpop.permute.xlu1 %79  ;;  %v36_v38 = vpop.permute.xlu0 %35 }
  0x8b   :  { %83 = vst.msk [vmem:[#allocation2 + $0x8] sm:$0xf] %vm82_vm4, %v80_v37 }
  0x8c   :  { %39 = vst.msk [vmem:[#allocation2] sm:$0xf] %vm38_vm5, %v36_v38 }
  0x8e   :  { %v43_v39 = vpop.permute.xlu1 %42  ;;  %v117_v40 = vpop.permute.xlu0 %116 }
  0x8f   :  { %46 = vst.msk [vmem:[#allocation2] sm:$0xf] %vm45_vm6, %v43_v39 }
  0x90   :  { %120 = vst.msk [vmem:[#allocation2 + $0x10] sm:$0xf] %vm119_vm7, %v117_v40 }
  0x92   :  { %v124_v41 = vpop.permute.xlu1 %123  ;;  %v87_v42 = vpop.permute.xlu0 %86 }
  0x93   :  { %127 = vst.msk [vmem:[#allocation2 + $0x10] sm:$0xf] %vm1433_vm8, %v124_v41  ;;  %vm147_vm8 = vcmask 134152  }
  0x94   :  { %90 = vst.msk [vmem:[#allocation2 + $0x8] sm:$0xf] %vm1434_vm9, %v87_v42  ;;  %vm140_vm9 = vcmask 986952  }
  0x96   :  { %v94_v43 = vpop.permute.xlu1 %93  ;;  %v50_v44 = vpop.permute.xlu0 %49 }
  0x97   :  { %97 = vst.msk [vmem:[#allocation2 + $0x8] sm:$0xf] %vm96_vm10, %v94_v43 }
  0x98   :  { %53 = vst.msk [vmem:[#allocation2] sm:$0xf] %vm52_vm11, %v50_v44 }
  0x99   :  { %104 = vst.msk [vmem:[#allocation2 + $0x8] sm:$0xf] %vm103_vm12, %v101_v36 }
  0x9a   :  { %v57_v45 = vpop.permute.xlu1 %56  ;;  %v131_v46 = vpop.permute.xlu0 %130 }
  0x9b   :  { %60 = vst.msk [vmem:[#allocation2] sm:$0xf] %vm59_vm13, %v57_v45 }
  0x9c   :  { %134 = vst.msk [vmem:[#allocation2 + $0x10] sm:$0xf] %vm133_vm14, %v131_v46 }
  0x9d   :  { %67 = vst.msk [vmem:[#allocation2] sm:$0xf] %vm66_vm15, %v64_v34 }
  0x9e   :  { %v145_v47 = vpop.permute.xlu1 %144  ;;  %v138_v48 = vpop.permute.xlu0 %137 }
  0x9f   :  { %148 = vst.msk [vmem:[#allocation2 + $0x18] sm:$0xf] %vm147_vm8, %v145_v47 }
  0xa0   :  { %141 = vst.msk [vmem:[#allocation2 + $0x10] sm:$0xf] %vm140_vm9, %v138_v48  ;;  %v1161_v49 = vld [vmem:[#allocation2 + $0x8] sm:$0xff] }
  0xa2   :  { %v391_v50 = vpop.permute.xlu0 %390  ;;  %v422_v51 = vpop.permute.xlu1 %421 }
  0xa3   :  { %394 = vst.msk [vmem:[#allocation2 + $0x8] sm:$0xf] %vm68_vm0, %v391_v50  ;;  %vm1435_vm0 = vcmask 658952  }
  0xa4   :  { %v1164_v52 = vld [vmem:[#allocation2] sm:$0xff] }
  0xa6   :  { %v1166_v53 = vld [vmem:[#allocation2 + $0x18] sm:$0xff]  ;;  %v367_v55 = vpop.permute.xlu0 %366  ;;  %v398_v56 = vpop.permute.xlu1 %397 }
  0xa7   :  { %v1168_v54 = vld [vmem:[#allocation2 + $0x10] sm:$0xff]  ;;  %351 = vrot.lane.b32.xlu0 %v1166_v53, %s1070_s7  ;;  %325 = vrot.lane.b32.xlu1 %v1166_v53, %s1071_s8  ;;  %369 = vst.msk [vmem:[#allocation2] sm:$0xf] %vm38_vm5, %v367_v55  ;;  %vm275_vm5 = vcmask 834560  }
  0xa8   :  { %425 = vst.msk [vmem:[#allocation2 + $0x10] sm:$0xf] %vm105_vm2, %v422_v51  ;;  %vm353_vm2 = vcmask 637952  }
  0xa9   :  { %400 = vst.msk [vmem:[#allocation2 + $0x8] sm:$0xf] %vm75_vm1, %v398_v56  ;;  %vm1436_vm1 = vcmask 593352  }
  0xaa   :  { %v429_v57 = vpop.permute.xlu0 %428  ;;  %v373_v58 = vpop.permute.xlu1 %372 }
  0xab   :  { %299 = vrot.lane.b32.xlu0 %v1166_v53, %s1072_s9  ;;  %273 = vrot.lane.b32.xlu1 %v1166_v53, %s1073_s10  ;;  %375 = vst.msk [vmem:[#allocation2] sm:$0xf] %vm45_vm6, %v373_v58  ;;  %vm249_vm6 = vcmask 842752  }
  0xac   :  { %431 = vst.msk [vmem:[#allocation2 + $0x10] sm:$0xf] %vm112_vm3, %v429_v57  ;;  %vm327_vm3 = vcmask 646144  }
  0xae   :  { %v404_v59 = vpop.permute.xlu0 %403  ;;  %v435_v60 = vpop.permute.xlu1 %434 }
  0xaf   :  { %345 = vrot.lane.b32.xlu0 %v1164_v52, %s1070_s7  ;;  %319 = vrot.lane.b32.xlu1 %v1164_v52, %s1071_s8  ;;  %437 = vst.msk [vmem:[#allocation2 + $0x10] sm:$0xf] %vm119_vm7, %v435_v60  ;;  %vm223_vm7 = vcmask 850944  }
  0xb0   :  { %406 = vst.msk [vmem:[#allocation2 + $0x8] sm:$0xf] %vm82_vm4, %v404_v59  ;;  %vm301_vm4 = vcmask 654336   ;;  %v1367_v59 = vld [vmem:[%s1430_s1] sm:$0xff]  ;;  %s1079_s1 = smov [#allocation7]  }
  0xb1   :  { %s958_s18 = sshll.u32 %s1079_s1, 4  ;;  %s959_s18 = int_to_ptr.vmem [resolvable:$true] %s958_s18 }
  0xb2   :  { %v379_v61 = vpop.permute.xlu0 %378  ;;  %v410_v62 = vpop.permute.xlu1 %409  ;;  %s1026_s19 = scalar_lea.vmem %s959_s18, 768  ;;  %p1031_p6 = scmp.lt.s32.totalorder %s959_s18, %s959_s18 }
  0xb3   :  { %293 = vrot.lane.b32.xlu0 %v1164_v52, %s1072_s9  ;;  %267 = vrot.lane.b32.xlu1 %v1164_v52, %s1073_s10  ;;  %381 = vst.msk [vmem:[#allocation2] sm:$0xf] %vm52_vm11, %v379_v61  ;;  %p1027_p5 = scmp.ne.s32.totalorder %s959_s18, %s1026_s19  ;;  %p1032_p7 = scmp.lt.s32.totalorder %s1026_s19, %s1026_s19 }
  0xb4   :  { %412 = vst.msk [vmem:[#allocation2 + $0x8] sm:$0xf] %vm1435_vm0, %v410_v62 }
  0xb5   :  { %p1033_p8 = por %p1032_p7, %p1031_p6 }
  0xb6   :  { %v441_v63 = vpop.permute.xlu0 %440  ;;  %v385_v1 = vpop.permute.xlu1 %384 }
  0xb7   :  { %241 = vrot.lane.b32.xlu0 %v1164_v52, %s1074_s11  ;;  %215 = vrot.lane.b32.xlu1 %v1164_v52, %s1075_s12  ;;  %387 = vst.msk [vmem:[#allocation2] sm:$0xf] %vm59_vm13, %v385_v1  ;;  %p1034_p9 = pnand %p1033_p8, %p1027_p5 }
  0xb8   :  { %443 = vst.msk [vmem:[#allocation2 + $0x10] sm:$0xf] %vm1436_vm1, %v441_v63 }
  0xb9   :  { %393 = vst.msk [vmem:[#allocation2] sm:$0xf] %vm66_vm15, %v391_v50 }
  0xba   :  { %v416_v2 = vpop.permute.xlu0 %415  ;;  %v447_v3 = vpop.permute.xlu1 %446 }
  0xbb   :  { %189 = vrot.lane.b32.xlu0 %v1164_v52, %s1076_s13  ;;  %163 = vrot.lane.b32.xlu1 %v1164_v52, %s1077_s14  ;;  %449 = vst.msk [vmem:[#allocation2 + $0x10] sm:$0xf] %vm133_vm14, %v447_v3 }
  0xbc   :  { %418 = vst.msk [vmem:[#allocation2 + $0x8] sm:$0xf] %vm96_vm10, %v416_v2  ;;  %vm729_vm10 = vcmask 588800  }
  0xbd   :  { %424 = vst.msk [vmem:[#allocation2 + $0x8] sm:$0xf] %vm103_vm12, %v422_v51 }
  0xbe   :  { %v459_v4 = vpop.permute.xlu1 %458  ;;  %v453_v5 = vpop.permute.xlu0 %452 }
  0xbf   :  { %347 = vrot.lane.b32.xlu0 %v1161_v49, %s1070_s7  ;;  %349 = vrot.lane.b32.xlu1 %v1168_v54, %s1070_s7  ;;  %461 = vst.msk [vmem:[#allocation2 + $0x18] sm:$0xf] %vm147_vm8, %v459_v4  ;;  %vm197_vm8 = vcmask 1031168  }
  0xc0   :  { %455 = vst.msk [vmem:[#allocation2 + $0x10] sm:$0xf] %vm140_vm9, %v453_v5  ;;  %v1247_v7 = vld [vmem:[#allocation2] sm:$0xff]  ;;  %vm171_vm9 = vcmask 1039360  }
  0xc3   :  { %323 = vrot.lane.b32.xlu0 %v1168_v54, %s1071_s8  ;;  %321 = vrot.lane.b32.xlu1 %v1161_v49, %s1071_s8 }
  0xc4   :  { %v1259_v9 = vld [vmem:[#allocation2 + $0x8] sm:$0xff] }
  0xc6   :  { %v621_v6 = vld [vmem:[#allocation2 + $0x18] sm:$0xff] }
  0xc7   :  { %295 = vrot.lane.b32.xlu0 %v1161_v49, %s1072_s9  ;;  %297 = vrot.lane.b32.xlu1 %v1168_v54, %s1072_s9  ;;  %v1257_v8 = vld [vmem:[#allocation2 + $0x10] sm:$0xff] }
  0xcb   :  { %271 = vrot.lane.b32.xlu0 %v1168_v54, %s1073_s10  ;;  %269 = vrot.lane.b32.xlu1 %v1161_v49, %s1073_s10 }
  0xcf   :  { %243 = vrot.lane.b32.xlu0 %v1161_v49, %s1074_s11  ;;  %245 = vrot.lane.b32.xlu1 %v1168_v54, %s1074_s11 }
  0xd3   :  { %219 = vrot.lane.b32.xlu0 %v1168_v54, %s1075_s12  ;;  %217 = vrot.lane.b32.xlu1 %v1161_v49, %s1075_s12 }
  0xd7   :  { %191 = vrot.lane.b32.xlu0 %v1161_v49, %s1076_s13  ;;  %193 = vrot.lane.b32.xlu1 %v1168_v54, %s1076_s13 }
  0xdb   :  { %167 = vrot.lane.b32.xlu0 %v1168_v54, %s1077_s14  ;;  %165 = vrot.lane.b32.xlu1 %v1161_v49, %s1077_s14 }
  0xdf   :  { %632 = vrot.lane.b32.xlu0 %v621_v6, %s1071_s8  ;;  %657 = vrot.lane.b32.xlu1 %v621_v6, %s1070_s7 }
  0xe3   :  { %582 = vrot.lane.b32.xlu0 %v621_v6, %s1073_s10  ;;  %607 = vrot.lane.b32.xlu1 %v621_v6, %s1072_s9 }
  0xe7   :  { %651 = vrot.lane.b32.xlu0 %v1247_v7, %s1070_s7  ;;  %626 = vrot.lane.b32.xlu1 %v1247_v7, %s1071_s8 }
  0xeb   :  { %601 = vrot.lane.b32.xlu0 %v1247_v7, %s1072_s9  ;;  %576 = vrot.lane.b32.xlu1 %v1247_v7, %s1073_s10 }
  0xef   :  { %655 = vrot.lane.b32.xlu0 %v1257_v8, %s1070_s7  ;;  %653 = vrot.lane.b32.xlu1 %v1259_v9, %s1070_s7 }
  0xf3   :  { %628 = vrot.lane.b32.xlu0 %v1259_v9, %s1071_s8  ;;  %630 = vrot.lane.b32.xlu1 %v1257_v8, %s1071_s8 }
  0xf7   :  { %605 = vrot.lane.b32.xlu0 %v1257_v8, %s1072_s9  ;;  %603 = vrot.lane.b32.xlu1 %v1259_v9, %s1072_s9 }
  0xfb   :  { %578 = vrot.lane.b32.xlu0 %v1259_v9, %s1073_s10  ;;  %580 = vrot.lane.b32.xlu1 %v1257_v8, %s1073_s10 }
  0xff   :  { %553 = vrot.lane.b32.xlu1 %v1259_v9, %s1074_s11  ;;  %551 = vrot.lane.b32.xlu0 %v1247_v7, %s1074_s11 }
 0x103   :  { %557 = vrot.lane.b32.xlu1 %v621_v6, %s1074_s11  ;;  %555 = vrot.lane.b32.xlu0 %v1257_v8, %s1074_s11 }
 0x107   :  { %247 = vrot.lane.b32.xlu0 %v1166_v53, %s1074_s11  ;;  %526 = vrot.lane.b32.xlu1 %v1247_v7, %s1075_s12 }
 0x10b   :  { %528 = vrot.lane.b32.xlu0 %v1259_v9, %s1075_s12  ;;  %530 = vrot.lane.b32.xlu1 %v1257_v8, %s1075_s12 }
 0x10f   :  { %532 = vrot.lane.b32.xlu0 %v621_v6, %s1075_s12  ;;  %221 = vrot.lane.b32.xlu1 %v1166_v53, %s1075_s12 }
 0x113   :  { %503 = vrot.lane.b32.xlu1 %v1259_v9, %s1076_s13  ;;  %501 = vrot.lane.b32.xlu0 %v1247_v7, %s1076_s13 }
 0x117   :  { %507 = vrot.lane.b32.xlu1 %v621_v6, %s1076_s13  ;;  %505 = vrot.lane.b32.xlu0 %v1257_v8, %s1076_s13 }
 0x119   :  { %v1302_v10 = vpop.permute.xlu0 %351  ;;  %v1304_v11 = vpop.permute.xlu1 %325 }
 0x11b   :  { %195 = vrot.lane.b32.xlu0 %v1166_v53, %s1076_s13  ;;  %476 = vrot.lane.b32.xlu1 %v1247_v7, %s1077_s14 }
 0x11d   :  { %v1310_v13 = vpop.permute.xlu0 %299  ;;  %v1312_v14 = vpop.permute.xlu1 %273 }
 0x11f   :  { %478 = vrot.lane.b32.xlu0 %v1259_v9, %s1077_s14  ;;  %480 = vrot.lane.b32.xlu1 %v1257_v8, %s1077_s14 }
 0x121   :  { %v346_v15 = vpop.permute.xlu0 %345  ;;  %v320_v16 = vpop.permute.xlu1 %319 }
 0x123   :  { %482 = vrot.lane.b32.xlu0 %v621_v6, %s1077_s14  ;;  %169 = vrot.lane.b32.xlu1 %v1166_v53, %s1077_s14 }
 0x125   :  { %v294_v18 = vpop.permute.xlu0 %293  ;;  %v268_v19 = vpop.permute.xlu1 %267 }
 0x127   :  { %726 = vperm.xlu0 %1005, %v723_v17  }
 0x129   :  { %v242_v20 = vpop.permute.xlu0 %241  ;;  %v216_v21 = vpop.permute.xlu1 %215 }
 0x12d   :  { %v190_v22 = vpop.permute.xlu0 %189  ;;  %v164_v23 = vpop.permute.xlu1 %163 }
 0x131   :  { %v348_v24 = vpop.permute.xlu0 %347  ;;  %v1324_v25 = vpop.permute.xlu1 %349 }
 0x132   :  { %v355_v26 = vsel %vm353_vm2, %v348_v24, %v1324_v25  ;;  %v354_v27 = vsel %vm353_vm2, %v346_v15, %v348_v24 }
 0x133   :  { %747 = vmatprep.subr.mxu0 %v355_v26 }
 0x134   :  { %748 = vmatpush1.msra.mxu0 %v354_v27 }
 0x135   :  { %v1329_v28 = vpop.permute.xlu0 %323  ;;  %v322_v29 = vpop.permute.xlu1 %321 }
 0x136   :  { %v329_v30 = vsel %vm327_vm3, %v322_v29, %v1329_v28  ;;  %v328_v31 = vsel %vm327_vm3, %v320_v16, %v322_v29 }
 0x137   :  { %749 = vmatprep.subr.mxu0 %v329_v30 }
 0x138   :  { %750 = vmatpush1.msra.mxu0 %v328_v31 }
 0x139   :  { %v296_v32 = vpop.permute.xlu0 %295  ;;  %v1334_v33 = vpop.permute.xlu1 %297 }
 0x13a   :  { %v303_v34 = vsel %vm301_vm4, %v296_v32, %v1334_v33  ;;  %v302_v35 = vsel %vm301_vm4, %v294_v18, %v296_v32 }
 0x13b   :  { %751 = vmatprep.subr.mxu0 %v303_v34 }
 0x13c   :  { %752 = vmatpush1.msra.mxu0 %v302_v35 }
 0x13d   :  { %v1339_v36 = vpop.permute.xlu0 %271  ;;  %v270_v37 = vpop.permute.xlu1 %269 }
 0x13e   :  { %v277_v38 = vsel %vm275_vm5, %v270_v37, %v1339_v36  ;;  %v276_v39 = vsel %vm275_vm5, %v268_v19, %v270_v37  ;;  %v278_v30 = vsel %vm275_vm5, %v1339_v36, %v1312_v14 }
 0x13f   :  { %753 = vmatprep.subr.mxu0 %v277_v38 }
 0x140   :  { %754 = vmatpush1.msra.mxu0 %v276_v39 }
 0x141   :  { %v244_v40 = vpop.permute.xlu0 %243  ;;  %v1344_v41 = vpop.permute.xlu1 %245 }
 0x142   :  { %v251_v42 = vsel %vm249_vm6, %v244_v40, %v1344_v41  ;;  %v250_v43 = vsel %vm249_vm6, %v242_v20, %v244_v40  ;;  %v330_v20 = vsel %vm327_vm3, %v1329_v28, %v1304_v11 }
 0x143   :  { %755 = vmatprep.subr.mxu0 %v251_v42 }
 0x144   :  { %756 = vmatpush1.msra.mxu0 %v250_v43 }
 0x145   :  { %v1349_v44 = vpop.permute.xlu0 %219  ;;  %v218_v45 = vpop.permute.xlu1 %217 }
 0x146   :  { %v225_v46 = vsel %vm223_vm7, %v218_v45, %v1349_v44  ;;  %v224_v47 = vsel %vm223_vm7, %v216_v21, %v218_v45 }
 0x147   :  { %757 = vmatprep.subr.mxu0 %v225_v46 }
 0x148   :  { %758 = vmatpush1.msra.mxu0 %v224_v47 }
 0x149   :  { %v192_v48 = vpop.permute.xlu0 %191  ;;  %v1354_v50 = vpop.permute.xlu1 %193 }
 0x14a   :  { %v199_v51 = vsel %vm197_vm8, %v192_v48, %v1354_v50  ;;  %v198_v53 = vsel %vm197_vm8, %v190_v22, %v192_v48 }
 0x14b   :  { %759 = vmatprep.subr.mxu0 %v199_v51 }
 0x14c   :  { %760 = vmatpush1.msra.mxu0 %v198_v53 }
 0x14d   :  { %v1359_v55 = vpop.permute.xlu0 %167  ;;  %v166_v56 = vpop.permute.xlu1 %165 }
 0x14e   :  { %v173_v57 = vsel %vm171_vm9, %v166_v56, %v1359_v55  ;;  %v172_v58 = vsel %vm171_vm9, %v164_v23, %v166_v56 }
 0x14f   :  { %761 = vmatprep.subr.mxu0 %v173_v57 }
 0x150   :  { %762 = vmatpush1.msra.mxu0 %v172_v58 }
 0x151   :  { %v633_v60 = vpop.permute.xlu0 %632  ;;  %763 = vmatprep.subr.mxu0 %v1161_v49  ;;  %v658_v61 = vpop.permute.xlu1 %657 }
 0x152   :  { %764 = vmatpush1.msra.mxu0 %v1164_v52 }
 0x153   :  { %970 = vmatmul.mubr.msk.f32.vlgmr.msra.gmra.mxu0 %vm729_vm10, %v1367_v59 }
 0x154   :  { %939 = vmatprep.mubr.f32.mxu0 %v1053_v0  ;;  %v356_v0 = vsel %vm353_vm2, %v1324_v25, %v1302_v10  ;;  %v304_v25 = vsel %vm301_vm4, %v1334_v33, %v1310_v13 }
 0x155   :  { %v583_v62 = vpop.permute.xlu0 %582  ;;  %v608_v63 = vpop.permute.xlu1 %607 }
 0x159   :  { %v652_v1 = vpop.permute.xlu0 %651  ;;  %v627_v2 = vpop.permute.xlu1 %626 }
 0x15d   :  { %v602_v3 = vpop.permute.xlu0 %601  ;;  %v577_v4 = vpop.permute.xlu1 %576 }
 0x161   :  { %v656_v5 = vpop.permute.xlu0 %655  ;;  %v654_v6 = vpop.permute.xlu1 %653 }
 0x162   :  { %v660_v12 = vsel %vm353_vm2, %v654_v6, %v656_v5  ;;  %v659_v49 = vsel %vm353_vm2, %v652_v1, %v654_v6  ;;  %v661_v15 = vsel %vm353_vm2, %v656_v5, %v658_v61 }
 0x163   :  { %818 = vmatprep.subr.mxu1 %v659_v49  ;;  %889 = vmatprep.subr.mxu0 %v661_v15 }
 0x164   :  { %819 = vmatpush1.msra.mxu1 %v356_v0  ;;  %890 = vmatpush1.msra.mxu0 %v660_v12 }
 0x165   :  { %v629_v52 = vpop.permute.xlu0 %628  ;;  %v631_v16 = vpop.permute.xlu1 %630 }
 0x166   :  { %v635_v17 = vsel %vm327_vm3, %v629_v52, %v631_v16  ;;  %v634_v18 = vsel %vm327_vm3, %v627_v2, %v629_v52  ;;  %v636_v19 = vsel %vm327_vm3, %v631_v16, %v633_v60 }
 0x167   :  { %820 = vmatprep.subr.mxu1 %v634_v18  ;;  %891 = vmatprep.subr.mxu0 %v636_v19 }
 0x168   :  { %821 = vmatpush1.msra.mxu1 %v330_v20  ;;  %892 = vmatpush1.msra.mxu0 %v635_v17 }
 0x169   :  { %v606_v21 = vpop.permute.xlu0 %605  ;;  %v604_v10 = vpop.permute.xlu1 %603 }
 0x16a   :  { %v610_v22 = vsel %vm301_vm4, %v604_v10, %v606_v21  ;;  %v609_v23 = vsel %vm301_vm4, %v602_v3, %v604_v10  ;;  %v611_v24 = vsel %vm301_vm4, %v606_v21, %v608_v63 }
 0x16b   :  { %822 = vmatprep.subr.mxu1 %v609_v23  ;;  %893 = vmatprep.subr.mxu0 %v611_v24 }
 0x16c   :  { %823 = vmatpush1.msra.mxu1 %v304_v25  ;;  %894 = vmatpush1.msra.mxu0 %v610_v22 }
 0x16d   :  { %v579_v26 = vpop.permute.xlu0 %578  ;;  %v581_v11 = vpop.permute.xlu1 %580 }
 0x16e   :  { %v585_v27 = vsel %vm275_vm5, %v579_v26, %v581_v11  ;;  %v584_v28 = vsel %vm275_vm5, %v577_v4, %v579_v26  ;;  %v586_v29 = vsel %vm275_vm5, %v581_v11, %v583_v62 }
 0x16f   :  { %824 = vmatprep.subr.mxu1 %v584_v28  ;;  %895 = vmatprep.subr.mxu0 %v586_v29 }
 0x170   :  { %825 = vmatpush1.msra.mxu1 %v278_v30  ;;  %896 = vmatpush1.msra.mxu0 %v585_v27 }
 0x171   :  { %v554_v31 = vpop.permute.xlu1 %553  ;;  %v552_v13 = vpop.permute.xlu0 %551 }
 0x172   :  { %v559_v32 = vsel %vm249_vm6, %v552_v13, %v554_v31 }
 0x173   :  { %826 = vmatprep.subr.mxu1 %v559_v32 }
 0x175   :  { %v558_v33 = vpop.permute.xlu1 %557  ;;  %v556_v34 = vpop.permute.xlu0 %555 }
 0x176   :  { %v560_v35 = vsel %vm249_vm6, %v554_v31, %v556_v34  ;;  %v561_v37 = vsel %vm249_vm6, %v556_v34, %v558_v33 }
 0x177   :  { %897 = vmatprep.subr.mxu0 %v561_v37 }
 0x178   :  { %898 = vmatpush1.msra.mxu0 %v560_v35 }
 0x179   :  { %v248_v38 = vpop.permute.xlu0 %247  ;;  %v527_v39 = vpop.permute.xlu1 %526 }
 0x17a   :  { %v252_v14 = vsel %vm249_vm6, %v1344_v41, %v248_v38 }
 0x17b   :  { %827 = vmatpush1.msra.mxu1 %v252_v14 }
 0x17d   :  { %v529_v36 = vpop.permute.xlu0 %528  ;;  %v531_v40 = vpop.permute.xlu1 %530 }
 0x17e   :  { %v534_v42 = vsel %vm223_vm7, %v527_v39, %v529_v36  ;;  %v535_v48 = vsel %vm223_vm7, %v529_v36, %v531_v40 }
 0x17f   :  { %828 = vmatprep.subr.mxu1 %v534_v42 }
 0x181   :  { %v533_v43 = vpop.permute.xlu0 %532  ;;  %v222_v45 = vpop.permute.xlu1 %221 }
 0x182   :  { %v226_v46 = vsel %vm223_vm7, %v1349_v44, %v222_v45  ;;  %v536_v47 = vsel %vm223_vm7, %v531_v40, %v533_v43 }
 0x183   :  { %829 = vmatpush1.msra.mxu1 %v226_v46  ;;  %899 = vmatprep.subr.mxu0 %v536_v47 }
 0x184   :  { %900 = vmatpush1.msra.mxu0 %v535_v48 }
 0x185   :  { %v504_v51 = vpop.permute.xlu1 %503  ;;  %v502_v41 = vpop.permute.xlu0 %501 }
 0x186   :  { %v509_v53 = vsel %vm197_vm8, %v502_v41, %v504_v51 }
 0x187   :  { %830 = vmatprep.subr.mxu1 %v509_v53 }
 0x189   :  { %v508_v56 = vpop.permute.xlu1 %507  ;;  %v506_v57 = vpop.permute.xlu0 %505 }
 0x18a   :  { %v510_v58 = vsel %vm197_vm8, %v504_v51, %v506_v57  ;;  %v511_v60 = vsel %vm197_vm8, %v506_v57, %v508_v56 }
 0x18b   :  { %901 = vmatprep.subr.mxu0 %v511_v60 }
 0x18c   :  { %902 = vmatpush1.msra.mxu0 %v510_v58 }
 0x18d   :  { %v196_v44 = vpop.permute.xlu0 %195  ;;  %v477_v61 = vpop.permute.xlu1 %476 }
 0x18e   :  { %v200_v62 = vsel %vm197_vm8, %v1354_v50, %v196_v44 }
 0x18f   :  { %831 = vmatpush1.msra.mxu1 %v200_v62 }
 0x191   :  { %v479_v63 = vpop.permute.xlu0 %478  ;;  %v481_v1 = vpop.permute.xlu1 %480 }
 0x192   :  { %v484_v2 = vsel %vm171_vm9, %v477_v61, %v479_v63  ;;  %v485_v12 = vsel %vm171_vm9, %v479_v63, %v481_v1 }
 0x193   :  { %832 = vmatprep.subr.mxu1 %v484_v2 }
 0x195   :  { %v483_v3 = vpop.permute.xlu0 %482  ;;  %v170_v4 = vpop.permute.xlu1 %169 }
 0x196   :  { %v174_v5 = vsel %vm171_vm9, %v1359_v55, %v170_v4  ;;  %v486_v6 = vsel %vm171_vm9, %v481_v1, %v483_v3 }
 0x197   :  { %833 = vmatpush1.msra.mxu1 %v174_v5  ;;  %903 = vmatprep.subr.mxu0 %v486_v6 }
 0x198   :  { %834 = vmatprep.subr.mxu1 %v1247_v7  ;;  %904 = vmatpush1.msra.mxu0 %v485_v12 }
 0x199   :  { %835 = vmatpush1.msra.mxu1 %v1168_v54  ;;  %905 = vmatprep.subr.mxu0 %v1257_v8 }
 0x19a   :  { %971 = vmatmul.mubr.msk.f32.vlgmr.msra.gmra.mxu1 %vm729_vm10, %v1367_v59  ;;  %906 = vmatpush1.msra.mxu0 %v1259_v9 }
 0x19b   :  { %972 = vmatmul.mubr.msk.f32.vlgmr.msra.gmra.mxu0 %vm729_vm10, %v1367_v59 }
 0x1a2   :  { %v727_v50 = vpop.permute.xlu0 %726 }
 0x213   :  { %v799_v55 = vpop.f32.mrf.mxu0 }
 0x214   :  { %v800_v49 = vadd.f32 %v799_v55, %v727_v50 }
 0x215   :  { %v801_v15 = vpop.f32.mrf.mxu0 }
 0x216   :  { %v802_v0 = vadd.f32 %v801_v15, %v727_v50  ;;  %946 = vst [vmem:[#allocation7] sm:$0xff] %v800_v49 }
 0x218   :  { %947 = vst [vmem:[#allocation7 + $0x8] sm:$0xff] %v802_v0 }
 0x25a   :  { %v870_v7 = vpop.f32.mrf.mxu1 }
 0x25b   :  { %v871_v54 = vadd.f32 %v870_v7, %v727_v50  ;;  %v941_v8 = vpop.f32.mrf.mxu0 }
 0x25c   :  { %v942_v52 = vadd.f32 %v941_v8, %v727_v50  ;;  %v872_v16 = vpop.f32.mrf.mxu1 }
 0x25d   :  { %948 = vst [vmem:[#allocation7 + $0x10] sm:$0xff] %v871_v54  ;;  %v873_v17 = vadd.f32 %v872_v16, %v727_v50  ;;  %v943_v9 = vpop.f32.mrf.mxu0 }
 0x25e   :  { %951 = vst [vmem:[#allocation7 + $0x20] sm:$0xff] %v942_v52  ;;  %v944_v59 = vadd.f32 %v943_v9, %v727_v50 }
 0x25f   :  { %950 = vst [vmem:[#allocation7 + $0x18] sm:$0xff] %v873_v17 }
 0x260   :  { %952 = vst [vmem:[#allocation7 + $0x28] sm:$0xff] %v944_v59 }
 0x261   :  { %1037 = shalt.err (!%p1034_p9)
}
 0x262   :  { %s1080_s0 = smov 384   ;;  %s1081_s20 = smov 24  }
 0x263   :  { %964 = dma.vmem_to_hbm [thread:$0]  %s959_s18, 768, %s1432_s3, [#allocation6], %s1080_s0, %s1080_s0, %s1081_s20  }
 0x264   :  { %1048 = dma.done.wait [#allocation6], 768  }
 0x265   :  { %1049 = vsyncadd [#allocation6], 4294966528 }
 0x266   :  { %968 = vsyncpa [#allocation5], 1 }
 0x267   :  { %969 = vsyncpa [#allocation6], 1 }

</bundles_post_ra>
